<compile_context>
chip_gen: v7x
topology: tpu7x:2x2x1
jax: 0.10.0
libtpu: 0.0.40
codegen_flags: <defaults>
</compile_context>

<pallas_src>
import math

import jax
import jax.numpy as jnp
from jax.experimental import pallas as pl
from jax.experimental.pallas import tpu as pltpu


def _round_up(v: int, m: int) -> int:
    return (v + m - 1) // m * m


# ----------------------------------------------------------------------------
# Kernel
# ----------------------------------------------------------------------------
def gru_cell_kernel(a_ref, w_ref, b_ref, hy_ref, r_ref, z_ref, n_ref):
    """One batch tile of the GRU cell (single fused matmul).

    a_ref  : (TB, Hp + Ipad) f32   packed activations [h | x]
    w_ref  : (Hp + Ipad, 4*Hp) bf16 packed weights (resident)
    b_ref  : (1, 4*Hp) f32          packed biases   (resident)
    hy_ref : (TB, Hp) f32
    r_ref  : (TB, Hp) bf16
    z_ref  : (TB, Hp) bf16
    n_ref  : (TB, Hp) bf16
    """
    Hp = hy_ref.shape[1]

    a = a_ref[...]                       # f32
    h_f32 = a[:, 0:Hp]                   # lane-aligned slice; f32 carry term

    # Single MXU matmul: bf16 operands, f32 accumulation, f32 bias add.
    g = jnp.dot(a.astype(jnp.bfloat16), w_ref[...],
                preferred_element_type=jnp.float32) + b_ref[...]

    # All column slices are at multiples of Hp (>=128) -> lane-aligned.
    r_pre = g[:, 0 * Hp:1 * Hp]          # x@Wih_r + h@Whh_r + b_ih_r + b_hh_r
    z_pre = g[:, 1 * Hp:2 * Hp]
    i_n   = g[:, 2 * Hp:3 * Hp]          # x@Wih_n + b_ih_n
    h_n   = g[:, 3 * Hp:4 * Hp]          # h@Whh_n + b_hh_n

    resetgate = jax.nn.sigmoid(r_pre)
    inputgate = jax.nn.sigmoid(z_pre)
    newgate = jnp.tanh(i_n + resetgate * h_n)
    hy = newgate + inputgate * (h_f32 - newgate)

    # Direct, lane-dense, unmasked per-gate stores (no concatenate temp).
    hy_ref[...] = hy.astype(hy_ref.dtype)
    r_ref[...] = resetgate.astype(r_ref.dtype)
    z_ref[...] = inputgate.astype(z_ref.dtype)
    n_ref[...] = newgate.astype(n_ref.dtype)


# ----------------------------------------------------------------------------
# One-time parameter preprocessing (pack / pad / transpose / bf16)
# ----------------------------------------------------------------------------
def prepare_gru_params(w_ih, w_hh, b_ih, b_hh, *, param_dtype=jnp.bfloat16):
    """PyTorch layout -> single fused, TPU-friendly packed layout.

    w_ih : (3H, I), w_hh : (3H, H), b_ih/b_hh : (3H,)  (torch gate order r,z,n)
    Returns:
      w : (Hp + Ipad, 4*Hp) param_dtype   rows [0:Hp] take h, rows [Hp:] take x
      b : (1, 4*Hp) f32                   [b_r(ih+hh) | b_z(ih+hh) | b_ih_n | b_hh_n]
    """
    H3, I = w_ih.shape
    H = H3 // 3
    Hp = _round_up(H, 128)
    I_pad = _round_up(I, 8)
    Kp = Hp + I_pad

    wih_r, wih_z, wih_n = jnp.split(w_ih.astype(jnp.float32), 3, axis=0)  # (H, I)
    whh_r, whh_z, whh_n = jnp.split(w_hh.astype(jnp.float32), 3, axis=0)  # (H, H)
    bih_r, bih_z, bih_n = jnp.split(b_ih.astype(jnp.float32), 3)
    bhh_r, bhh_z, bhh_n = jnp.split(b_hh.astype(jnp.float32), 3)

    def col(hh_part, ih_part):
        blk = jnp.zeros((Kp, Hp), dtype=jnp.float32)
        if hh_part is not None:
            blk = blk.at[:H, :H].set(hh_part.T)
        if ih_part is not None:
            blk = blk.at[Hp:Hp + I, :H].set(ih_part.T)
        return blk

    w = jnp.concatenate(
        [col(whh_r, wih_r),      # -> r_pre
         col(whh_z, wih_z),      # -> z_pre
         col(None, wih_n),       # -> i_n
         col(whh_n, None)],      # -> h_n
        axis=1).astype(param_dtype)                       # (Kp, 4*Hp)

    def bpad(v):
        return jnp.pad(v, (0, Hp - H))

    b = jnp.concatenate(
        [bpad(bih_r + bhh_r), bpad(bih_z + bhh_z), bpad(bih_n), bpad(bhh_n)]
    ).reshape(1, 4 * Hp).astype(jnp.float32)

    return dict(w=w, b=b, input_size=I, input_pad=I_pad,
                hidden=H, hidden_pad=Hp)


# ----------------------------------------------------------------------------
# Batch tile selection (minimal padding, >=2 grid steps when batch permits)
# ----------------------------------------------------------------------------
def _choose_batch_tile(B: int):
    B8 = _round_up(B, 8)
    if B8 <= 8:
        return B8, B8
    # Aim for ~2 tiles (gives both v7x TensorCores work) with minimal padding;
    # cap the tile at 256 rows for large batches.
    tb = _round_up(-(-B8 // 2), 8)
    tb = min(tb, 256)
    return tb, _round_up(B8, tb)


# ----------------------------------------------------------------------------
# Forward wrapper (mirrors MyGRUCell.forward return tuple)
# ----------------------------------------------------------------------------
def my_gru_cell_forward(x, hx, params):
    """x: (B, I) f32, hx: (B, H) f32 or None.  Returns (hy, hy, r, z, n)."""
    B, I = x.shape
    H = params["hidden"]
    Hp = params["hidden_pad"]
    I_pad = params["input_pad"]
    assert I == params["input_size"]

    if hx is None:
        hx = jnp.zeros((B, H), dtype=x.dtype)

    TB, B_pad = _choose_batch_tile(B)
    Kp = Hp + I_pad

    # Packed activations [h | x] in f32 (kernel casts to bf16 only for the MXU;
    # the hy carry term stays f32).
    h_pad = jnp.pad(hx.astype(jnp.float32), ((0, B_pad - B), (0, Hp - H)))
    x_pad = jnp.pad(x.astype(jnp.float32), ((0, B_pad - B), (0, I_pad - I)))
    a = jnp.concatenate([h_pad, x_pad], axis=1)           # (B_pad, Kp)

    grid = (B_pad // TB,)

    hy_p, r_p, z_p, n_p = pl.pallas_call(
        gru_cell_kernel,
        out_shape=(
            jax.ShapeDtypeStruct((B_pad, Hp), jnp.float32),    # hy (carry)
            jax.ShapeDtypeStruct((B_pad, Hp), jnp.bfloat16),   # r
            jax.ShapeDtypeStruct((B_pad, Hp), jnp.bfloat16),   # z
            jax.ShapeDtypeStruct((B_pad, Hp), jnp.bfloat16),   # n
        ),
        grid=grid,
        in_specs=[
            pl.BlockSpec((TB, Kp), lambda b: (b, 0)),          # packed [h|x] tile
            pl.BlockSpec((Kp, 4 * Hp), lambda b: (0, 0)),      # packed W (resident)
            pl.BlockSpec((1, 4 * Hp), lambda b: (0, 0)),       # packed bias (resident)
        ],
        out_specs=(
            pl.BlockSpec((TB, Hp), lambda b: (b, 0)),
            pl.BlockSpec((TB, Hp), lambda b: (b, 0)),
            pl.BlockSpec((TB, Hp), lambda b: (b, 0)),
            pl.BlockSpec((TB, Hp), lambda b: (b, 0)),
        ),
        compiler_params=pltpu.CompilerParams(
            dimension_semantics=("parallel",),
            vmem_limit_bytes=32 * 1024 * 1024,
        ),
    )(a, params["w"], params["b"])

    hy = hy_p[:B, :H]
    resetgate = r_p[:B, :H].astype(jnp.float32)
    inputgate = z_p[:B, :H].astype(jnp.float32)
    newgate = n_p[:B, :H].astype(jnp.float32)
    return hy, hy, resetgate, inputgate, newgate


# ----------------------------------------------------------------------------
# Parameter init (matches MyRNNCellBase.reset_parameters) and references
# ----------------------------------------------------------------------------
def init_gru_params(key, input_size, hidden_size):
    stdv = 1.0 / math.sqrt(hidden_size)
    k1, k2, k3, k4 = jax.random.split(key, 4)
    w_ih = jax.random.uniform(k1, (3 * hidden_size, input_size),
                              minval=-stdv, maxval=stdv, dtype=jnp.float32)
    w_hh = jax.random.uniform(k2, (3 * hidden_size, hidden_size),
                              minval=-stdv, maxval=stdv, dtype=jnp.float32)
    b_ih = jax.random.uniform(k3, (3 * hidden_size,),
                              minval=-stdv, maxval=stdv, dtype=jnp.float32)
    b_hh = jax.random.uniform(k4, (3 * hidden_size,),
                              minval=-stdv, maxval=stdv, dtype=jnp.float32)
    return w_ih, w_hh, b_ih, b_hh


def reference_gru(x, hx, w_ih, w_hh, b_ih, b_hh, quantize_matmul=True):
    """Pure-JAX reference.  With quantize_matmul=True it applies the kernel's
    bf16 matmul-operand quantization (f32 bias, f32 carry); with False it is
    the exact f32 PyTorch MyGRUCell math."""
    if quantize_matmul:
        q = lambda a: a.astype(jnp.bfloat16).astype(jnp.float32)
    else:
        q = lambda a: a
    gi = q(x) @ q(w_ih).T + b_ih
    gh = q(hx) @ q(w_hh).T + b_hh
    H = hx.shape[1]
    i_r, i_i, i_n = gi[:, :H], gi[:, H:2 * H], gi[:, 2 * H:]
    h_r, h_i, h_n = gh[:, :H], gh[:, H:2 * H], gh[:, 2 * H:]
    r = jax.nn.sigmoid(i_r + h_r)
    z = jax.nn.sigmoid(i_i + h_i)
    n = jnp.tanh(i_n + r * h_n)
    hy = n + z * (hx - n)          # f32 carry, same as the kernel
    return hy, hy, r, z, n


if __name__ == "__main__":
    hidden_size = 16
    input_size = 32
    batch = 8

    key = jax.random.PRNGKey(0)
    k_param, k_x, k_h = jax.random.split(key, 3)

    w_ih, w_hh, b_ih, b_hh = init_gru_params(k_param, input_size, hidden_size)
    x = jax.random.normal(k_x, (batch, input_size), dtype=jnp.float32)
    hx = jax.random.normal(k_h, (batch, hidden_size), dtype=jnp.float32)

    # One-time parameter preprocessing (off the per-step path).
    params = prepare_gru_params(w_ih, w_hh, b_ih, b_hh)
    params = jax.tree_util.tree_map(
        lambda a: jax.block_until_ready(a) if isinstance(a, jax.Array) else a,
        params)

    outs = my_gru_cell_forward(x, hx, params)
    outs = jax.block_until_ready(outs)

    # Check against reference with matching bf16 matmul-operand quantization.
    refs_q = reference_gru(x, hx, w_ih, w_hh, b_ih, b_hh, quantize_matmul=True)
    tols = (2e-3, 2e-3, 8e-3, 8e-3, 8e-3)   # hy f32; r/z/n stored in bf16
    for o, r, tol in zip(outs, refs_q, tols):
        assert o.shape == r.shape, (o.shape, r.shape)
        assert o.dtype == jnp.float32
        assert jnp.max(jnp.abs(o - r)) < tol, float(jnp.max(jnp.abs(o - r)))

    # Loose sanity check against the exact fp32 PyTorch-equivalent math.
    refs_f32 = reference_gru(x, hx, w_ih, w_hh, b_ih, b_hh, quantize_matmul=False)
    for o, r in zip(outs, refs_f32):
        assert jnp.max(jnp.abs(o - r)) < 5e-2, float(jnp.max(jnp.abs(o - r)))

    print("KERNEL_OK")
</pallas_src>

<mosaic_0001>
module attributes {stable_mosaic.version = 11 : i64} {
  func.func @gru_cell_kernel(%arg0: i32, %arg1: memref<8x160xf32, #tpu.memory_space<vmem>>, %arg2: memref<160x512xbf16, #tpu.memory_space<vmem>>, %arg3: memref<1x512xf32, #tpu.memory_space<vmem>>, %arg4: memref<8x128xf32, #tpu.memory_space<vmem>>, %arg5: memref<8x128xbf16, #tpu.memory_space<vmem>>, %arg6: memref<8x128xbf16, #tpu.memory_space<vmem>>, %arg7: memref<8x128xbf16, #tpu.memory_space<vmem>>) attributes {dimension_semantics = [#tpu.dimension_semantics<parallel>], iteration_bounds = array<i64: 1>, scalar_prefetch = 0 : i64, scratch_operands = 0 : i64, tpu.core_type = #tpu.core_type<tc>, window_params = [{transform_indices = @transform_0, window_bounds = array<i64: 8, 160>}, {pipeline_mode = #tpu.pipeline_mode<synchronous>, transform_indices = @transform_1, window_bounds = array<i64: 160, 512>}, {pipeline_mode = #tpu.pipeline_mode<synchronous>, transform_indices = @transform_2, window_bounds = array<i64: 1, 512>}, {transform_indices = @transform_3, window_bounds = array<i64: 8, 128>}, {transform_indices = @transform_4, window_bounds = array<i64: 8, 128>}, {transform_indices = @transform_5, window_bounds = array<i64: 8, 128>}, {transform_indices = @transform_6, window_bounds = array<i64: 8, 128>}]} {
    %c0 = arith.constant 0 : index
    %c0_0 = arith.constant 0 : index
    %0 = vector.load %arg1[%c0, %c0_0] : memref<8x160xf32, #tpu.memory_space<vmem>>, vector<8x160xf32>
    %1 = vector.extract_strided_slice %0 {offsets = [0, 0], sizes = [8, 128], strides = [1, 1]} : vector<8x160xf32> to vector<8x128xf32>
    %2 = arith.truncf %0 : vector<8x160xf32> to vector<8x160xbf16>
    %c0_1 = arith.constant 0 : index
    %c0_2 = arith.constant 0 : index
    %3 = vector.load %arg2[%c0_1, %c0_2] : memref<160x512xbf16, #tpu.memory_space<vmem>>, vector<160x512xbf16>
    %cst = arith.constant dense<0.000000e+00> : vector<8x512xf32>
    %4 = tpu.matmul %2, %3, %cst {dimension_numbers = #tpu.dot_dimension_numbers<[1], [0], [0], [1], [0, 0, 1, 1], [], []>} : vector<8x160xbf16>, vector<160x512xbf16>, vector<8x512xf32> -> vector<8x512xf32>
    %c0_3 = arith.constant 0 : index
    %c0_4 = arith.constant 0 : index
    %5 = vector.load %arg3[%c0_3, %c0_4] : memref<1x512xf32, #tpu.memory_space<vmem>>, vector<1x512xf32>
    %6 = vector.broadcast %5 : vector<1x512xf32> to vector<8x512xf32>
    %7 = arith.addf %4, %6 : vector<8x512xf32>
    %8 = vector.extract_strided_slice %7 {offsets = [0, 0], sizes = [8, 128], strides = [1, 1]} : vector<8x512xf32> to vector<8x128xf32>
    %9 = vector.extract_strided_slice %7 {offsets = [0, 128], sizes = [8, 128], strides = [1, 1]} : vector<8x512xf32> to vector<8x128xf32>
    %10 = vector.extract_strided_slice %7 {offsets = [0, 256], sizes = [8, 128], strides = [1, 1]} : vector<8x512xf32> to vector<8x128xf32>
    %11 = vector.extract_strided_slice %7 {offsets = [0, 384], sizes = [8, 128], strides = [1, 1]} : vector<8x512xf32> to vector<8x128xf32>
    %12 = arith.negf %8 : vector<8x128xf32>
    %13 = math.exp %12 : vector<8x128xf32>
    %cst_5 = arith.constant 1.000000e+00 : f32
    %14 = vector.broadcast %cst_5 : f32 to vector<8x128xf32>
    %15 = arith.addf %14, %13 : vector<8x128xf32>
    %16 = arith.divf %14, %15 : vector<8x128xf32>
    %17 = arith.negf %9 : vector<8x128xf32>
    %18 = math.exp %17 : vector<8x128xf32>
    %cst_6 = arith.constant 1.000000e+00 : f32
    %19 = vector.broadcast %cst_6 : f32 to vector<8x128xf32>
    %20 = arith.addf %19, %18 : vector<8x128xf32>
    %21 = arith.divf %19, %20 : vector<8x128xf32>
    %22 = arith.mulf %16, %11 : vector<8x128xf32>
    %23 = arith.addf %10, %22 : vector<8x128xf32>
    %24 = math.tanh %23 : vector<8x128xf32>
    %25 = arith.subf %1, %24 : vector<8x128xf32>
    %26 = arith.mulf %21, %25 : vector<8x128xf32>
    %27 = arith.addf %24, %26 : vector<8x128xf32>
    %c0_7 = arith.constant 0 : index
    %c0_8 = arith.constant 0 : index
    %28 = vector.load %arg4[%c0_7, %c0_8] : memref<8x128xf32, #tpu.memory_space<vmem>>, vector<8x128xf32>
    tpu.vector_store %arg4[%c0_7, %c0_8], %27 {strides = array<i32>} : memref<8x128xf32, #tpu.memory_space<vmem>>, vector<8x128xf32>,
    %29 = arith.truncf %16 : vector<8x128xf32> to vector<8x128xbf16>
    %c0_9 = arith.constant 0 : index
    %c0_10 = arith.constant 0 : index
    %30 = vector.load %arg5[%c0_9, %c0_10] : memref<8x128xbf16, #tpu.memory_space<vmem>>, vector<8x128xbf16>
    tpu.vector_store %arg5[%c0_9, %c0_10], %29 {strides = array<i32>} : memref<8x128xbf16, #tpu.memory_space<vmem>>, vector<8x128xbf16>,
    %31 = arith.truncf %21 : vector<8x128xf32> to vector<8x128xbf16>
    %c0_11 = arith.constant 0 : index
    %c0_12 = arith.constant 0 : index
    %32 = vector.load %arg6[%c0_11, %c0_12] : memref<8x128xbf16, #tpu.memory_space<vmem>>, vector<8x128xbf16>
    tpu.vector_store %arg6[%c0_11, %c0_12], %31 {strides = array<i32>} : memref<8x128xbf16, #tpu.memory_space<vmem>>, vector<8x128xbf16>,
    %33 = arith.truncf %24 : vector<8x128xf32> to vector<8x128xbf16>
    %c0_13 = arith.constant 0 : index
    %c0_14 = arith.constant 0 : index
    %34 = vector.load %arg7[%c0_13, %c0_14] : memref<8x128xbf16, #tpu.memory_space<vmem>>, vector<8x128xbf16>
    tpu.vector_store %arg7[%c0_13, %c0_14], %33 {strides = array<i32>} : memref<8x128xbf16, #tpu.memory_space<vmem>>, vector<8x128xbf16>,
    return
  }
  func.func @transform_0(%arg0: i32) -> (i32, i32) {
    %c0_i32 = arith.constant 0 : i32
    %c0_i32_0 = arith.constant 0 : i32
    return %arg0, %c0_i32 : i32, i32
  }
  func.func @transform_1(%arg0: i32) -> (i32, i32) {
    %c0_i32 = arith.constant 0 : i32
    %c0_i32_0 = arith.constant 0 : i32
    %c0_i32_1 = arith.constant 0 : i32
    return %c0_i32, %c0_i32_0 : i32, i32
  }
  func.func @transform_2(%arg0: i32) -> (i32, i32) {
    %c0_i32 = arith.constant 0 : i32
    %c0_i32_0 = arith.constant 0 : i32
    %c0_i32_1 = arith.constant 0 : i32
    return %c0_i32, %c0_i32_0 : i32, i32
  }
  func.func @transform_3(%arg0: i32) -> (i32, i32) {
    %c0_i32 = arith.constant 0 : i32
    %c0_i32_0 = arith.constant 0 : i32
    return %arg0, %c0_i32 : i32, i32
  }
  func.func @transform_4(%arg0: i32) -> (i32, i32) {
    %c0_i32 = arith.constant 0 : i32
    %c0_i32_0 = arith.constant 0 : i32
    return %arg0, %c0_i32 : i32, i32
  }
  func.func @transform_5(%arg0: i32) -> (i32, i32) {
    %c0_i32 = arith.constant 0 : i32
    %c0_i32_0 = arith.constant 0 : i32
    return %arg0, %c0_i32 : i32, i32
  }
  func.func @transform_6(%arg0: i32) -> (i32, i32) {
    %c0_i32 = arith.constant 0 : i32
    %c0_i32_0 = arith.constant 0 : i32
    return %arg0, %c0_i32 : i32, i32
  }
}

</mosaic_0001>

<bundles_post_ra>
// kernel: tpu_custom_call.1
= control target key start
LH: loop header
LB: loop body
LE: loop exit
PB: predicated region body
PF: predicated region fallthrough
CT: control target
= control target key end

     0   :  { %12 = vsyncpa [#allocation3], 0  ;;  %s883_s0 = inlined_call_operand.hbm [shape: f32[8,160], index: 0, kind: input, shape index: {}]   ;;  %s884_s1 = inlined_call_operand.hbm [shape: bf16[160,512], index: 1, kind: input, shape index: {}]   ;;  %s885_s2 = inlined_call_operand.vmem [shape: f32[1,512], index: 2, kind: input, shape index: {}]   ;;  %s886_s3 = inlined_call_operand.hbm [shape: f32[8,128], index: 3, kind: output, shape index: {0}]   ;;  %s887_s4 = inlined_call_operand.hbm [shape: bf16[8,128], index: 4, kind: output, shape index: {1}]   ;;  %s888_s5 = inlined_call_operand.hbm [shape: bf16[8,128], index: 5, kind: output, shape index: {2}]   ;;  %s889_s6 = inlined_call_operand.hbm [shape: bf16[8,128], index: 6, kind: output, shape index: {3}]  }
   0x1   :  { %13 = vsyncpa [#allocation6], 0 }
   0x2   :  { %14 = vsyncpa [#allocation4], 0 }
   0x3   :  { %15 = vsyncpa [#allocation9], 0 }
   0x4   :  { %16 = vsyncpa [#allocation12], 0  ;;  %s746_s21 = smov [#allocation2]   ;;  %s747_s23 = smov [#allocation5]  }
   0x5   :  { %s23_s22 = sshll.u32 %s746_s21, 4  ;;  %s32_s24 = sshll.u32 %s747_s23, 4  ;;  %s24_s22 = int_to_ptr.vmem [resolvable:$true] %s23_s22  ;;  %s789_s24 = int_to_ptr.vmem [resolvable:$true] %s32_s24 }
   0x6   :  { %s604_s27 = scalar_lea.hbm %s883_s0, 256 }
   0x7   :  { %p605_p0 = scmp.ne.s32.totalorder %s883_s0, %s604_s27  ;;  %p608_p1 = scmp.lt.u32.totalorder %s604_s27, %s883_s0 }
   0x9   :  { %p610_p2 = pnand %p608_p1, %p605_p0 }
   0xb   :  { %613 = shalt.err (!%p610_p2)
}
   0xc   :  { %s614_s8 = scalar_lea.vmem %s24_s22, 256  ;;  %p619_p4 = scmp.lt.s32.totalorder %s24_s22, %s24_s22 }
   0xd   :  { %p615_p3 = scmp.ne.s32.totalorder %s24_s22, %s614_s8  ;;  %p620_p5 = scmp.lt.s32.totalorder %s614_s8, %s614_s8 }
   0xf   :  { %p621_p6 = por %p620_p5, %p619_p4 }
  0x11   :  { %p622_p7 = pnand %p621_p6, %p615_p3 }
  0x13   :  { %625 = shalt.err (!%p622_p7)
}
  0x14   :  { %26 = dma.hbm_to_vmem [thread:$0]  %s883_s0, 256, %s24_s22, [#allocation3]  }
  0x15   :  { %s626_s13 = scalar_lea.hbm %s884_s1, 5120 }
  0x16   :  { %p627_p8 = scmp.ne.s32.totalorder %s884_s1, %s626_s13  ;;  %p630_p9 = scmp.lt.u32.totalorder %s626_s13, %s884_s1 }
  0x18   :  { %p632_p10 = pnand %p630_p9, %p627_p8 }
  0x1a   :  { %635 = shalt.err (!%p632_p10)
}
  0x1b   :  { %s636_s18 = scalar_lea.vmem %s789_s24, 5120  ;;  %p641_p12 = scmp.lt.s32.totalorder %s789_s24, %s789_s24 }
  0x1c   :  { %p637_p11 = scmp.ne.s32.totalorder %s789_s24, %s636_s18  ;;  %p642_p13 = scmp.lt.s32.totalorder %s636_s18, %s636_s18 }
  0x1e   :  { %p643_p0 = por %p642_p13, %p641_p12 }
  0x20   :  { %p644_p1 = pnand %p643_p0, %p637_p11 }
  0x22   :  { %647 = shalt.err (!%p644_p1)
}
  0x23   :  { %s748_s0 = smov 256   ;;  %s749_s19 = smov 16  }
  0x24   :  { %38 = dma.hbm_to_vmem [thread:$0]  %s884_s1, 5120, %s789_s24, [#allocation6], %s748_s0, %s748_s0, %s749_s19  }
  0x25   :  { %736 = dma.done.wait [#allocation3], 256  }
  0x26   :  { %737 = vsyncadd [#allocation3], 4294967040 }
  0x27   :  { %738 = dma.done.wait [#allocation6], 5120  }
  0x28   :  { %739 = vsyncadd [#allocation6], 4294962176  ;;  %v534_v0 = vld [vmem:[#allocation5 + $0x4] ss:$16 sps:$4 sm:$0xff]   ;;  %v536_v1 = vld [vmem:[#allocation5] ss:$16 sps:$4 sm:$0xff]   ;;  %v94_v44 = vlaneseq }
  0x29   :  { %318 = vmatprep.subr.bf16.mxu0 %v534_v0  ;;  %v537_v2 = vld [vmem:[#allocation5 + $0x24] ss:$16 sps:$4 sm:$0xff]   ;;  %v539_v3 = vld [vmem:[#allocation5 + $0x20] ss:$16 sps:$4 sm:$0xff]   ;;  %v552_v7 = vld [vmem:[#allocation5 + $0xc] ss:$16 sps:$4 sm:$0xff]  }
  0x2a   :  { %319 = vmatpush1.bf16.msra.mxu0 %v536_v1  ;;  %v540_v4 = vld [vmem:[#allocation5 + $0x44] ss:$16 sps:$4 sm:$0xff]   ;;  %v542_v5 = vld [vmem:[#allocation5 + $0x40] ss:$16 sps:$4 sm:$0xff]   ;;  %v554_v8 = vld [vmem:[#allocation5 + $0x8] ss:$16 sps:$4 sm:$0xff]   ;;  %359 = vmatprep.subr.bf16.mxu1 %v552_v7 }
  0x2b   :  { %320 = vmatprep.subr.bf16.mxu0 %v537_v2  ;;  %v543_v6 = vld [vmem:[#allocation5 + $0x64] ss:$16 sps:$4 sm:$0xff]   ;;  %v545_v9 = vld [vmem:[#allocation5 + $0x60] ss:$16 sps:$4 sm:$0xff]   ;;  %360 = vmatpush1.bf16.msra.mxu1 %v554_v8  ;;  %v558_v10 = vld [vmem:[#allocation5 + $0x2c] ss:$16 sps:$4 sm:$0xff]  }
  0x2c   :  { %v560_v11 = vld [vmem:[#allocation5 + $0x28] ss:$16 sps:$4 sm:$0xff]   ;;  %v546_v12 = vld [vmem:[#allocation5 + $0x84] ss:$16 sps:$4 sm:$0xff]   ;;  %361 = vmatprep.subr.bf16.mxu1 %v558_v10  ;;  %v548_v13 = vld [vmem:[#allocation5 + $0x80] ss:$16 sps:$4 sm:$0xff]  }
  0x2d   :  { %v564_v14 = vld [vmem:[#allocation5 + $0x4c] ss:$16 sps:$4 sm:$0xff]   ;;  %v549_v15 = vld [vmem:[#allocation5 + $0xa4] ss:$16 sps:$4 sm:$0xff]   ;;  %v566_v16 = vld [vmem:[#allocation5 + $0x48] ss:$16 sps:$4 sm:$0xff]  }
  0x2e   :  { %321 = vmatpush1.bf16.msra.mxu0 %v539_v3  ;;  %v570_v17 = vld [vmem:[#allocation5 + $0x6c] ss:$16 sps:$4 sm:$0xff]   ;;  %v551_v18 = vld [vmem:[#allocation5 + $0xa0] ss:$16 sps:$4 sm:$0xff]   ;;  %v572_v19 = vld [vmem:[#allocation5 + $0x68] ss:$16 sps:$4 sm:$0xff]  }
  0x2f   :  { %322 = vmatprep.subr.bf16.mxu0 %v540_v4  ;;  %362 = vmatpush1.bf16.msra.mxu1 %v560_v11  ;;  %v49_v20 = vld [vmem:[#allocation2 + $0x8] sm:$0xff]  ;;  %vm314_vm0 = vcmask 261120   ;;  %v555_v21 = vld [vmem:[#allocation5 + $0xc4] ss:$16 sps:$4 sm:$0xff]   ;;  %v557_v24 = vld [vmem:[#allocation5 + $0xc0] ss:$16 sps:$4 sm:$0xff]  }
  0x30   :  { %363 = vmatprep.subr.bf16.mxu1 %v564_v14  ;;  %v576_v22 = vld [vmem:[#allocation5 + $0x8c] ss:$16 sps:$4 sm:$0xff]   ;;  %v51_v23 = vpack.c.bf16 %v49_v20, %v49_v20  ;;  %v578_v25 = vld [vmem:[#allocation5 + $0x88] ss:$16 sps:$4 sm:$0xff]   ;;  %v561_v26 = vld [vmem:[#allocation5 + $0xe4] ss:$16 sps:$4 sm:$0xff]  }
  0x31   :  { %v579_v27 = vld [vmem:[#allocation5 + $0xac] ss:$16 sps:$4 sm:$0xff]   ;;  %v563_v28 = vld [vmem:[#allocation5 + $0xe0] ss:$16 sps:$4 sm:$0xff]   ;;  %v581_v29 = vld [vmem:[#allocation5 + $0xa8] ss:$16 sps:$4 sm:$0xff]  }
  0x32   :  { %323 = vmatpush1.bf16.msra.mxu0 %v542_v5  ;;  %522 = vmatprep.mubr.msk.bf16.mxu0 %vm314_vm0, %v51_v23  ;;  %v567_v30 = vld [vmem:[#allocation5 + $0x104] ss:$16 sps:$4 sm:$0xff]   ;;  %v582_v31 = vld [vmem:[#allocation5 + $0xcc] ss:$16 sps:$4 sm:$0xff]   ;;  %v569_v32 = vld [vmem:[#allocation5 + $0x100] ss:$16 sps:$4 sm:$0xff]  }
  0x33   :  { %324 = vmatprep.subr.bf16.mxu0 %v543_v6  ;;  %364 = vmatpush1.bf16.msra.mxu1 %v566_v16  ;;  %v584_v33 = vld [vmem:[#allocation5 + $0xc8] ss:$16 sps:$4 sm:$0xff]   ;;  %v573_v34 = vld [vmem:[#allocation5 + $0x124] ss:$16 sps:$4 sm:$0xff]   ;;  %v585_v35 = vld [vmem:[#allocation5 + $0xec] ss:$16 sps:$4 sm:$0xff]  }
  0x34   :  { %365 = vmatprep.subr.bf16.mxu1 %v570_v17  ;;  %523 = vmatprep.mubr.msk.bf16.mxu1 %vm314_vm0, %v51_v23  ;;  %v575_v36 = vld [vmem:[#allocation5 + $0x120] ss:$16 sps:$4 sm:$0xff]   ;;  %v587_v38 = vld [vmem:[#allocation5 + $0xe8] ss:$16 sps:$4 sm:$0xff]   ;;  %v588_v39 = vld [vmem:[#allocation5 + $0x10c] ss:$16 sps:$4 sm:$0xff]  }
  0x35   :  { %v820_v37 = vld [vmem:[#allocation2] sm:$0xff]  ;;  %v590_v41 = vld [vmem:[#allocation5 + $0x108] ss:$16 sps:$4 sm:$0xff]   ;;  %v591_v42 = vld [vmem:[#allocation5 + $0x12c] ss:$16 sps:$4 sm:$0xff]   ;;  %v95_v45 = vshrl.u32 %v94_v44, 7 }
  0x36   :  { %325 = vmatpush1.bf16.msra.mxu0 %v545_v9  ;;  %v50_v40 = vpack.c.bf16 %v820_v37, %v820_v37  ;;  %v593_v43 = vld [vmem:[#allocation5 + $0x128] ss:$16 sps:$4 sm:$0xff]   ;;  %v92_v47 = vld [vmem:[%s885_s2] sm:$0xf]  ;;  %s750_s2 = smov [#allocation8]   ;;  %s751_s24 = smov [#allocation10]  }
  0x37   :  { %326 = vmatprep.subr.bf16.mxu0 %v546_v12  ;;  %366 = vmatpush1.bf16.msra.mxu1 %v572_v19  ;;  %v96_v46 = vsub.s32 0, %v95_v45  ;;  %v100_v48 = vsub.s32 1, %v95_v45  ;;  %v108_v3 = vsub.s32 3, %v95_v45  ;;  %v104_v4 = vsub.s32 2, %v95_v45  ;;  %s441_s23 = sshll.u32 %s750_s2, 4  ;;  %s451_s25 = sshll.u32 %s751_s24, 4  ;;  %s442_s23 = int_to_ptr.vmem [resolvable:$true] %s441_s23  ;;  %s827_s25 = int_to_ptr.vmem [resolvable:$true] %s451_s25 }
  0x38   :  { %367 = vmatprep.subr.bf16.mxu1 %v576_v22  ;;  %s648_s26 = scalar_lea.vmem %s442_s23, 64  ;;  %p653_p3 = scmp.lt.s32.totalorder %s442_s23, %s442_s23 }
  0x39   :  { %v97_v49 = vrot.slane %v92_v47, %v96_v46  ;;  %v101_v50 = vrot.slane %v92_v47, %v100_v48  ;;  %v109_v5 = vrot.slane %v92_v47, %v108_v3  ;;  %v105_v6 = vrot.slane %v92_v47, %v104_v4  ;;  %p649_p2 = scmp.ne.s32.totalorder %s442_s23, %s648_s26  ;;  %p654_p4 = scmp.lt.s32.totalorder %s648_s26, %s648_s26 }
  0x3a   :  { %327 = vmatpush1.bf16.msra.mxu0 %v548_v13 }
  0x3b   :  { %328 = vmatprep.subr.bf16.mxu0 %v549_v15  ;;  %368 = vmatpush1.bf16.msra.mxu1 %v578_v25  ;;  %p655_p5 = por %p654_p4, %p653_p3 }
  0x3c   :  { %369 = vmatprep.subr.bf16.mxu1 %v579_v27 }
  0x3d   :  { %p656_p6 = pnand %p655_p5, %p649_p2 }
  0x3e   :  { %329 = vmatpush1.bf16.msra.mxu0 %v551_v18 }
  0x3f   :  { %330 = vmatprep.subr.bf16.mxu0 %v555_v21  ;;  %370 = vmatpush1.bf16.msra.mxu1 %v581_v29 }
  0x40   :  { %371 = vmatprep.subr.bf16.mxu1 %v582_v31 }
  0x42   :  { %331 = vmatpush1.bf16.msra.mxu0 %v557_v24 }
  0x43   :  { %332 = vmatprep.subr.bf16.mxu0 %v561_v26  ;;  %372 = vmatpush1.bf16.msra.mxu1 %v584_v33 }
  0x44   :  { %373 = vmatprep.subr.bf16.mxu1 %v585_v35 }
  0x46   :  { %333 = vmatpush1.bf16.msra.mxu0 %v563_v28 }
  0x47   :  { %334 = vmatprep.subr.bf16.mxu0 %v567_v30  ;;  %374 = vmatpush1.bf16.msra.mxu1 %v587_v38 }
  0x48   :  { %375 = vmatprep.subr.bf16.mxu1 %v588_v39 }
  0x4a   :  { %335 = vmatpush1.bf16.msra.mxu0 %v569_v32 }
  0x4b   :  { %336 = vmatprep.subr.bf16.mxu0 %v573_v34  ;;  %376 = vmatpush1.bf16.msra.mxu1 %v590_v41 }
  0x4c   :  { %377 = vmatprep.subr.bf16.mxu1 %v591_v42 }
  0x4e   :  { %337 = vmatpush1.bf16.msra.mxu0 %v575_v36 }
  0x4f   :  { %378 = vmatpush1.bf16.msra.mxu1 %v593_v43 }
  0x51   :  { %351 = vmatmul.mubr.bf16.vlgmr.msra.gmra.mrb[0].mxu0 %v50_v40 }
  0x52   :  { %392 = vmatmul.mubr.bf16.vlgmr.msra.gmra.mrb[0].mxu1 %v50_v40 }
 0x124   :  { %v352_v51 = vpop.f32.mrb[0].mxu0 }
 0x125   :  { %v353_v52 = vadd.f32 %v352_v51, %v97_v49  ;;  %v354_v53 = vpop.f32.mrb[1].mxu0  ;;  %v393_v59 = vpop.f32.mrb[0].mxu1 }
 0x126   :  { %v355_v54 = vadd.f32 %v354_v53, %v101_v50  ;;  %v356_v55 = vpop.f32.mrb[2].mxu0  ;;  %v395_v60 = vpop.f32.mrb[1].mxu1  ;;  %v394_v10 = vadd.f32 %v393_v59, %v105_v6 }
 0x127   :  { %v524_v56 = vmul.f32 -1.442695, %v353_v52  ;;  %v357_v57 = vpop.f32.mrb[3].mxu0  ;;  %v397_v61 = vpop.f32.mrb[2].mxu1  ;;  %v396_v7 = vadd.f32 %v395_v60, %v109_v5 }
 0x128   :  { %v525_v58 = vmul.f32 -1.442695, %v355_v54  ;;  %v398_v62 = vpop.f32.mrb[3].mxu1 }
 0x129   :  { %594 = vpow2.f32 %v524_v56 }
 0x12a   :  { %596 = vpow2.f32 %v525_v58 }
 0x133   :  { %v595_v63 = vpop.eup %594 }
 0x134   :  { %v597_v0 = vpop.eup %596  ;;  %v403_v1 = vadd.f32 1.0, %v595_v63 }
 0x135   :  { %v409_v2 = vadd.f32 1.0, %v597_v0 }
 0x136   :  { %598 = vrcp.f32 %v403_v1 }
 0x137   :  { %600 = vrcp.f32 %v409_v2 }
 0x140   :  { %v599_v8 = vpop.eup %598 }
 0x141   :  { %v601_v9 = vpop.eup %600  ;;  %v412_v11 = vmul.f32 %v599_v8, %v396_v7  ;;  %v419_v12 = vpack.c.bf16 %v599_v8, %v599_v8 }
 0x142   :  { %v421_v13 = vpack.c.bf16 %v601_v9, %v601_v9 }
 0x143   :  { %v413_v14 = vadd.f32 %v412_v11, %v394_v10  ;;  %420 = vst [vmem:[#allocation8] sm:$0xf] %v419_v12 }
 0x144   :  { %659 = shalt.err (!%p656_p6)
}
 0x145   :  { %s660_s29 = scalar_lea.hbm %s887_s4, 64 }
 0x146   :  { %p661_p7 = scmp.ne.s32.totalorder %s887_s4, %s660_s29  ;;  %p664_p8 = scmp.lt.u32.totalorder %s660_s29, %s887_s4 }
 0x148   :  { %p666_p9 = pnand %p664_p8, %p661_p7 }
 0x14a   :  { %669 = shalt.err (!%p666_p9)
}
 0x14b   :  { %444 = dma.vmem_to_hbm [thread:$0]  %s442_s23, 64, %s887_s4, [#allocation9]   ;;  %422 = vst [vmem:[#allocation10] sm:$0xf] %v421_v13  ;;  %602 = vtanh.f32 %v413_v14 }
 0x14c   :  { %s670_s12 = scalar_lea.vmem %s827_s25, 64  ;;  %p675_p11 = scmp.lt.s32.totalorder %s827_s25, %s827_s25 }
 0x14d   :  { %p671_p10 = scmp.ne.s32.totalorder %s827_s25, %s670_s12  ;;  %p676_p12 = scmp.lt.s32.totalorder %s670_s12, %s670_s12 }
 0x14f   :  { %p677_p13 = por %p676_p12, %p675_p11 }
 0x151   :  { %p678_p0 = pnand %p677_p13, %p671_p10 }
 0x153   :  { %681 = shalt.err (!%p678_p0)
}
 0x154   :  { %s682_s15 = scalar_lea.hbm %s888_s5, 64 }
 0x155   :  { %p683_p1 = scmp.ne.s32.totalorder %s888_s5, %s682_s15  ;;  %p686_p2 = scmp.lt.u32.totalorder %s682_s15, %s888_s5 }
 0x157   :  { %p688_p3 = pnand %p686_p2, %p683_p1 }
 0x159   :  { %691 = shalt.err (!%p688_p3)
}
 0x15a   :  { %454 = dma.vmem_to_hbm [thread:$0]  %s827_s25, 64, %s888_s5, [#allocation9]   ;;  %v603_v15 = vpop.eup %602 }
 0x15b   :  { %s752_s20 = smov [#allocation11]   ;;  %v415_v16 = vsub.f32 %v820_v37, %v603_v15  ;;  %v423_v17 = vpack.c.bf16 %v603_v15, %v603_v15  ;;  %s753_s1 = smov [#allocation7]  }
 0x15c   :  { %s461_s21 = sshll.u32 %s752_s20, 4  ;;  %s431_s22 = sshll.u32 %s753_s1, 4  ;;  %s462_s21 = int_to_ptr.vmem [resolvable:$true] %s461_s21  ;;  %s432_s22 = int_to_ptr.vmem [resolvable:$true] %s431_s22 }
 0x15d   :  { %v416_v18 = vmul.f32 %v601_v9, %v415_v16  ;;  %424 = vst [vmem:[#allocation11] sm:$0xf] %v423_v17  ;;  %s692_s2 = scalar_lea.vmem %s462_s21, 64  ;;  %p697_p5 = scmp.lt.s32.totalorder %s462_s21, %s462_s21 }
 0x15e   :  { %p693_p4 = scmp.ne.s32.totalorder %s462_s21, %s692_s2  ;;  %p698_p6 = scmp.lt.s32.totalorder %s692_s2, %s692_s2 }
 0x160   :  { %p699_p7 = por %p698_p6, %p697_p5 }
 0x162   :  { %p700_p8 = pnand %p699_p7, %p693_p4 }
 0x164   :  { %703 = shalt.err (!%p700_p8)
}
 0x165   :  { %s704_s24 = scalar_lea.hbm %s889_s6, 64 }
 0x166   :  { %p705_p9 = scmp.ne.s32.totalorder %s889_s6, %s704_s24  ;;  %p708_p10 = scmp.lt.u32.totalorder %s704_s24, %s889_s6 }
 0x168   :  { %p710_p11 = pnand %p708_p10, %p705_p9 }
 0x16a   :  { %713 = shalt.err (!%p710_p11)
}
 0x16b   :  { %464 = dma.vmem_to_hbm [thread:$0]  %s462_s21, 64, %s889_s6, [#allocation12]   ;;  %v417_v19 = vadd.f32 %v603_v15, %v416_v18 }
 0x16c   :  { %s714_s7 = scalar_lea.vmem %s432_s22, 128  ;;  %p719_p13 = scmp.lt.s32.totalorder %s432_s22, %s432_s22 }
 0x16d   :  { %418 = vst [vmem:[#allocation7] sm:$0xff] %v417_v19  ;;  %p715_p12 = scmp.ne.s32.totalorder %s432_s22, %s714_s7  ;;  %p720_p0 = scmp.lt.s32.totalorder %s714_s7, %s714_s7 }
 0x16f   :  { %p721_p1 = por %p720_p0, %p719_p13 }
 0x171   :  { %p722_p2 = pnand %p721_p1, %p715_p12 }
 0x173   :  { %725 = shalt.err (!%p722_p2)
}
 0x174   :  { %s726_s10 = scalar_lea.hbm %s886_s3, 128 }
 0x175   :  { %p727_p3 = scmp.ne.s32.totalorder %s886_s3, %s726_s10  ;;  %p730_p4 = scmp.lt.u32.totalorder %s726_s10, %s886_s3 }
 0x177   :  { %p732_p5 = pnand %p730_p4, %p727_p3 }
 0x179   :  { %735 = shalt.err (!%p732_p5)
}
 0x17a   :  { %434 = dma.vmem_to_hbm [thread:$0]  %s432_s22, 128, %s886_s3, [#allocation4]  }
 0x17b   :  { %740 = dma.done.wait [#allocation4], 128  }
 0x17c   :  { %741 = vsyncadd [#allocation4], 4294967168 }
 0x17d   :  { %742 = dma.done.wait [#allocation9], 128  }
 0x17e   :  { %743 = vsyncadd [#allocation9], 4294967168 }
 0x17f   :  { %744 = dma.done.wait [#allocation12], 64  }
 0x180   :  { %745 = vsyncadd [#allocation12], 4294967232 }
 0x181   :  { %477 = vsyncpa [#allocation3], 1 }
 0x182   :  { %478 = vsyncpa [#allocation6], 1 }
 0x183   :  { %479 = vsyncpa [#allocation4], 1 }
 0x184   :  { %480 = vsyncpa [#allocation9], 1 }
 0x185   :  { %481 = vsyncpa [#allocation12], 1 }

</bundles_post_ra>
